<compile_context>
chip_gen: v7x
topology: tpu7x:2x2x1
jax: 0.10.0
libtpu: 0.0.40
codegen_flags: <defaults>
</compile_context>

<pallas_src>
import functools

import jax
import jax.numpy as jnp
from jax.experimental import pallas as pl
from jax.experimental.pallas import tpu as pltpu

BN_EPS = 1e-5
MXU_DTYPE = jnp.bfloat16  # MXU-native operand dtype on v6e/v7x; accum stays f32.


def _pick_tile(M: int) -> int:
    # Biggest lane-dense tile that still leaves >= 2 grid steps (v7x megacore)
    # and amortizes the ~0.35 us/step pipeline overhead.
    for tm in (4096, 2048, 1024, 512, 256, 128):
        if M >= 2 * tm:
            return tm
    return 128


# ---------------------------------------------------------------------------
# Kernel 1: conv-as-GEMM (one dot per M tile, lane-dense output) with fused
#           per-tile BatchNorm partial statistics (lane-axis reductions).
# ---------------------------------------------------------------------------
def _conv_stats_kernel(w_ref, p_ref, y_ref, stat_ref):
    # w_ref: (Cout, 9*Cin) bf16, resident across the grid
    # p_ref: (9*Cin, tm)   bf16, one im2col tile
    y = jnp.dot(w_ref[...], p_ref[...], preferred_element_type=jnp.float32)
    y_ref[...] = y                                  # lane-dense (Cout, tm) store
    s = jnp.sum(y, axis=1, keepdims=True)           # (Cout, 1)  lane-axis reduce
    ss = jnp.sum(y * y, axis=1, keepdims=True)      # (Cout, 1)
    stat_ref[...] = jnp.concatenate([s, ss], axis=1)[None]   # (1, Cout, 2)


# ---------------------------------------------------------------------------
# Kernel 2: fold per-tile partial stats -> batch mean / biased variance
#           (PyTorch training-mode forward), then normalize + affine + ReLU.
# ---------------------------------------------------------------------------
def _bn_relu_kernel(stat_ref, g_ref, b_ref, y_ref, o_ref, *, m_total):
    tot = jnp.sum(stat_ref[...], axis=0)            # (Cout, 2): fold tile partials
    inv_m = 1.0 / m_total
    mean = tot[:, 0:1] * inv_m                      # (Cout, 1)
    var = tot[:, 1:2] * inv_m - mean * mean         # biased variance
    inv = jax.lax.rsqrt(var + BN_EPS)
    scale = g_ref[...] * inv                        # (Cout, 1)
    shift = b_ref[...] - mean * scale               # (Cout, 1)
    o_ref[...] = jnp.maximum(y_ref[...] * scale + shift, 0.0).astype(o_ref.dtype)


# ---------------------------------------------------------------------------
# One (Conv3x3 same -> BatchNorm(train) -> ReLU) stage.
# ---------------------------------------------------------------------------
def conv3x3_bn_relu(x_cm, w_oihw, gamma, beta):
    """x_cm: (Cin, N, H, W) f32 -> (Cout, N, H, W) f32.  Conv bias omitted:
    train-mode BN cancels any per-channel constant exactly."""
    Cin, N, H, W = x_cm.shape
    Cout = w_oihw.shape[0]
    M = N * H * W
    K = 9 * Cin
    tm = _pick_tile(M)
    grid_m = pl.cdiv(M, tm)
    Mp = grid_m * tm

    # im2col (transposed): P[tap*Cin + c, (n,y,x)] = x_pad[c, n, y+ky, x+kx].
    # Single fused XLA pad+gather; M lands on the lane axis for the kernel.
    xp = jnp.pad(x_cm, ((0, 0), (0, 0), (1, 1), (1, 1)))
    taps = [xp[:, :, ky:ky + H, kx:kx + W] for ky in range(3) for kx in range(3)]
    p = jnp.stack(taps, axis=0).reshape(K, M).astype(MXU_DTYPE)
    if Mp != M:
        # zero columns contribute 0 to sum / sum_sq, so BN stats stay exact
        p = jnp.pad(p, ((0, 0), (0, Mp - M)))
    w2 = w_oihw.transpose(0, 2, 3, 1).reshape(Cout, K).astype(MXU_DTYPE)

    y, stats = pl.pallas_call(
        _conv_stats_kernel,
        out_shape=(
            jax.ShapeDtypeStruct((Cout, Mp), jnp.float32),
            jax.ShapeDtypeStruct((grid_m, Cout, 2), jnp.float32),
        ),
        grid_spec=pltpu.PrefetchScalarGridSpec(
            num_scalar_prefetch=0,
            grid=(grid_m,),
            in_specs=[
                pl.BlockSpec((Cout, K), lambda i: (0, 0)),        # weights: resident
                pl.BlockSpec((K, tm), lambda i: (0, i)),          # one im2col tile/step
            ],
            out_specs=[
                pl.BlockSpec((Cout, tm), lambda i: (0, i)),       # lane-dense conv out
                pl.BlockSpec((1, Cout, 2), lambda i: (i, 0, 0)),  # per-tile BN partials
            ],
        ),
        compiler_params=pltpu.CompilerParams(dimension_semantics=("parallel",)),
    )(w2, p)

    g2 = gamma.reshape(Cout, 1).astype(jnp.float32)
    b2 = beta.reshape(Cout, 1).astype(jnp.float32)

    out = pl.pallas_call(
        functools.partial(_bn_relu_kernel, m_total=float(M)),
        out_shape=jax.ShapeDtypeStruct((Cout, Mp), jnp.float32),
        grid_spec=pltpu.PrefetchScalarGridSpec(
            num_scalar_prefetch=0,
            grid=(grid_m,),
            in_specs=[
                pl.BlockSpec((grid_m, Cout, 2), lambda i: (0, 0, 0)),  # stats: resident
                pl.BlockSpec((Cout, 1), lambda i: (0, 0)),             # gamma
                pl.BlockSpec((Cout, 1), lambda i: (0, 0)),             # beta
                pl.BlockSpec((Cout, tm), lambda i: (0, i)),            # conv out tile
            ],
            out_specs=pl.BlockSpec((Cout, tm), lambda i: (0, i)),
        ),
        compiler_params=pltpu.CompilerParams(dimension_semantics=("parallel",)),
    )(stats, g2, b2, y)

    if Mp != M:
        out = out[:, :M]
    return out.reshape(Cout, N, H, W)


# ---------------------------------------------------------------------------
# inconv forward = double_conv forward.  Public API keeps PyTorch NCHW.
# ---------------------------------------------------------------------------
def inconv_forward(x_nchw, params):
    x = jnp.transpose(x_nchw, (1, 0, 2, 3))          # NCHW -> channel-major (tiny)
    y = conv3x3_bn_relu(x, params["w1"], params["g1"], params["beta1"])
    y = conv3x3_bn_relu(y, params["w2"], params["g2"], params["beta2"])
    return jnp.transpose(y, (1, 0, 2, 3))            # back to NCHW


# ---------------------------------------------------------------------------
# Pure-XLA reference with the SAME mixed-precision policy (bf16 MXU operands,
# f32 accumulation, f32 BN) so the kernel can be checked tightly.  The conv
# bias is applied here to verify it cancels through train-mode BN.
# ---------------------------------------------------------------------------
def _ref_forward(x_nchw, params):
    def conv(x, w, b):
        y = jax.lax.conv_general_dilated(
            x.astype(MXU_DTYPE), w.astype(MXU_DTYPE),
            window_strides=(1, 1), padding="SAME",
            dimension_numbers=("NCHW", "OIHW", "NCHW"),
            preferred_element_type=jnp.float32)
        return y + b[None, :, None, None]

    def bn_relu(y, g, b):
        mean = jnp.mean(y, axis=(0, 2, 3), keepdims=True)
        var = jnp.var(y, axis=(0, 2, 3), keepdims=True)   # biased, torch train fwd
        yhat = (y - mean) * jax.lax.rsqrt(var + BN_EPS)
        yhat = yhat * g[None, :, None, None] + b[None, :, None, None]
        return jnp.maximum(yhat, 0.0)

    y = bn_relu(conv(x_nchw, params["w1"], params["b1"]), params["g1"], params["beta1"])
    y = bn_relu(conv(y, params["w2"], params["b2"]), params["g2"], params["beta2"])
    return y


if __name__ == "__main__":
    in_ch, out_ch = 4, 8
    N, H, W = 2, 16, 16

    key = jax.random.PRNGKey(0)
    k = jax.random.split(key, 7)
    x = jax.random.normal(k[0], (N, in_ch, H, W), dtype=jnp.float32)   # NCHW input

    params = {
        # PyTorch-layout OIHW conv weights (deterministic synthetic init)
        "w1": 0.1 * jax.random.normal(k[1], (out_ch, in_ch, 3, 3), dtype=jnp.float32),
        "b1": 0.05 * jax.random.normal(k[2], (out_ch,), dtype=jnp.float32),
        "g1": 1.0 + 0.1 * jax.random.normal(k[3], (out_ch,), dtype=jnp.float32),
        "beta1": 0.1 * jax.random.normal(k[4], (out_ch,), dtype=jnp.float32),
        "w2": 0.1 * jax.random.normal(k[5], (out_ch, out_ch, 3, 3), dtype=jnp.float32),
        "b2": 0.05 * jax.random.normal(k[6], (out_ch,), dtype=jnp.float32),
        "g2": jnp.linspace(0.8, 1.2, out_ch, dtype=jnp.float32),
        "beta2": jnp.linspace(-0.1, 0.1, out_ch, dtype=jnp.float32),
    }

    out = jax.block_until_ready(jax.jit(inconv_forward)(x, params))
    ref = jax.block_until_ready(jax.jit(_ref_forward)(x, params))

    assert out.shape == (N, out_ch, H, W), out.shape
    # Matched-precision reference -> only f32 accumulation-order differences remain.
    assert bool(jnp.allclose(out, ref, rtol=2e-3, atol=2e-3)), float(
        jnp.max(jnp.abs(out - ref)))
    print("KERNEL_OK")
</pallas_src>

<mosaic_0001>
module attributes {stable_mosaic.version = 11 : i64} {
  func.func @_conv_stats_kernel(%arg0: i32, %arg1: memref<8x36xbf16, #tpu.memory_space<vmem>>, %arg2: memref<36x256xbf16, #tpu.memory_space<vmem>>, %arg3: memref<8x256xf32, #tpu.memory_space<vmem>>, %arg4: memref<1x8x2xf32, #tpu.memory_space<vmem>>) attributes {dimension_semantics = [#tpu.dimension_semantics<parallel>], iteration_bounds = array<i64: 2>, scalar_prefetch = 0 : i64, scratch_operands = 0 : i64, tpu.core_type = #tpu.core_type<tc>, window_params = [{pipeline_mode = #tpu.pipeline_mode<synchronous>, transform_indices = @transform_0, window_bounds = array<i64: 8, 36>}, {transform_indices = @transform_1, window_bounds = array<i64: 36, 256>}, {transform_indices = @transform_2, window_bounds = array<i64: 8, 256>}, {transform_indices = @transform_3, window_bounds = array<i64: 1, 8, 2>}]} {
    %c0 = arith.constant 0 : index
    %c0_0 = arith.constant 0 : index
    %0 = vector.load %arg1[%c0, %c0_0] : memref<8x36xbf16, #tpu.memory_space<vmem>>, vector<8x36xbf16>
    %c0_1 = arith.constant 0 : index
    %c0_2 = arith.constant 0 : index
    %1 = vector.load %arg2[%c0_1, %c0_2] : memref<36x256xbf16, #tpu.memory_space<vmem>>, vector<36x256xbf16>
    %cst = arith.constant dense<0.000000e+00> : vector<8x256xf32>
    %2 = tpu.matmul %0, %1, %cst {dimension_numbers = #tpu.dot_dimension_numbers<[1], [0], [0], [1], [0, 0, 1, 1], [], []>} : vector<8x36xbf16>, vector<36x256xbf16>, vector<8x256xf32> -> vector<8x256xf32>
    %c0_3 = arith.constant 0 : index
    %c0_4 = arith.constant 0 : index
    %3 = vector.load %arg3[%c0_3, %c0_4] : memref<8x256xf32, #tpu.memory_space<vmem>>, vector<8x256xf32>
    tpu.vector_store %arg3[%c0_3, %c0_4], %2 {strides = array<i32>} : memref<8x256xf32, #tpu.memory_space<vmem>>, vector<8x256xf32>,
    %cst_5 = arith.constant dense<0.000000e+00> : vector<8xf32>
    %4 = vector.multi_reduction <add>, %2, %cst_5 [1] : vector<8x256xf32> to vector<8xf32>
    %5 = vector.shape_cast %4 : vector<8xf32> to vector<8x1xf32>
    %6 = arith.mulf %2, %2 : vector<8x256xf32>
    %cst_6 = arith.constant dense<0.000000e+00> : vector<8xf32>
    %7 = vector.multi_reduction <add>, %6, %cst_6 [1] : vector<8x256xf32> to vector<8xf32>
    %8 = vector.shape_cast %7 : vector<8xf32> to vector<8x1xf32>
    %9 = tpu.concatenate %5, %8 in 1 : vector<8x1xf32>, vector<8x1xf32> -> vector<8x2xf32>
    %10 = vector.shape_cast %9 : vector<8x2xf32> to vector<1x8x2xf32>
    %c0_7 = arith.constant 0 : index
    %c0_8 = arith.constant 0 : index
    %c0_9 = arith.constant 0 : index
    %11 = vector.load %arg4[%c0_7, %c0_8, %c0_9] : memref<1x8x2xf32, #tpu.memory_space<vmem>>, vector<1x8x2xf32>
    tpu.vector_store %arg4[%c0_7, %c0_8, %c0_9], %10 {strides = array<i32>} : memref<1x8x2xf32, #tpu.memory_space<vmem>>, vector<1x8x2xf32>,
    return
  }
  func.func @transform_0(%arg0: i32) -> (i32, i32) {
    %c0_i32 = arith.constant 0 : i32
    %c0_i32_0 = arith.constant 0 : i32
    %c0_i32_1 = arith.constant 0 : i32
    return %c0_i32, %c0_i32_0 : i32, i32
  }
  func.func @transform_1(%arg0: i32) -> (i32, i32) {
    %c0_i32 = arith.constant 0 : i32
    %c0_i32_0 = arith.constant 0 : i32
    return %c0_i32, %arg0 : i32, i32
  }
  func.func @transform_2(%arg0: i32) -> (i32, i32) {
    %c0_i32 = arith.constant 0 : i32
    %c0_i32_0 = arith.constant 0 : i32
    return %c0_i32, %arg0 : i32, i32
  }
  func.func @transform_3(%arg0: i32) -> (i32, i32, i32) {
    %c0_i32 = arith.constant 0 : i32
    %c0_i32_0 = arith.constant 0 : i32
    %c0_i32_1 = arith.constant 0 : i32
    return %arg0, %c0_i32, %c0_i32_0 : i32, i32, i32
  }
}

module attributes {stable_mosaic.version = 11 : i64} {
  func.func @_bn_relu_kernel(%arg0: i32, %arg1: memref<2x8x2xf32, #tpu.memory_space<vmem>>, %arg2: memref<8x1xf32, #tpu.memory_space<vmem>>, %arg3: memref<8x1xf32, #tpu.memory_space<vmem>>, %arg4: memref<8x256xf32, #tpu.memory_space<vmem>>, %arg5: memref<8x256xf32, #tpu.memory_space<vmem>>) attributes {dimension_semantics = [#tpu.dimension_semantics<parallel>], iteration_bounds = array<i64: 2>, scalar_prefetch = 0 : i64, scratch_operands = 0 : i64, tpu.core_type = #tpu.core_type<tc>, window_params = [{pipeline_mode = #tpu.pipeline_mode<synchronous>, transform_indices = @transform_0, window_bounds = array<i64: 2, 8, 2>}, {pipeline_mode = #tpu.pipeline_mode<synchronous>, transform_indices = @transform_1, window_bounds = array<i64: 8, 1>}, {pipeline_mode = #tpu.pipeline_mode<synchronous>, transform_indices = @transform_2, window_bounds = array<i64: 8, 1>}, {transform_indices = @transform_3, window_bounds = array<i64: 8, 256>}, {transform_indices = @transform_4, window_bounds = array<i64: 8, 256>}]} {
    %c0 = arith.constant 0 : index
    %c0_0 = arith.constant 0 : index
    %c0_1 = arith.constant 0 : index
    %0 = vector.load %arg1[%c0, %c0_0, %c0_1] : memref<2x8x2xf32, #tpu.memory_space<vmem>>, vector<2x8x2xf32>
    %cst = arith.constant dense<0.000000e+00> : vector<8x2xf32>
    %1 = vector.multi_reduction <add>, %0, %cst [0] : vector<2x8x2xf32> to vector<8x2xf32>
    %2 = vector.extract_strided_slice %1 {offsets = [0, 0], sizes = [8, 1], strides = [1, 1]} : vector<8x2xf32> to vector<8x1xf32>
    %cst_2 = arith.constant 0.001953125 : f32
    %3 = vector.broadcast %cst_2 : f32 to vector<8x1xf32>
    %4 = arith.mulf %2, %3 : vector<8x1xf32>
    %5 = vector.extract_strided_slice %1 {offsets = [0, 1], sizes = [8, 1], strides = [1, 1]} : vector<8x2xf32> to vector<8x1xf32>
    %cst_3 = arith.constant 0.001953125 : f32
    %6 = vector.broadcast %cst_3 : f32 to vector<8x1xf32>
    %7 = arith.mulf %5, %6 : vector<8x1xf32>
    %8 = arith.mulf %4, %4 : vector<8x1xf32>
    %9 = arith.subf %7, %8 : vector<8x1xf32>
    %cst_4 = arith.constant 9.99999974E-6 : f32
    %10 = vector.broadcast %cst_4 : f32 to vector<8x1xf32>
    %11 = arith.addf %9, %10 : vector<8x1xf32>
    %12 = math.rsqrt %11 : vector<8x1xf32>
    %c0_5 = arith.constant 0 : index
    %c0_6 = arith.constant 0 : index
    %13 = vector.load %arg2[%c0_5, %c0_6] : memref<8x1xf32, #tpu.memory_space<vmem>>, vector<8x1xf32>
    %14 = arith.mulf %13, %12 : vector<8x1xf32>
    %c0_7 = arith.constant 0 : index
    %c0_8 = arith.constant 0 : index
    %15 = vector.load %arg3[%c0_7, %c0_8] : memref<8x1xf32, #tpu.memory_space<vmem>>, vector<8x1xf32>
    %16 = arith.mulf %4, %14 : vector<8x1xf32>
    %17 = arith.subf %15, %16 : vector<8x1xf32>
    %c0_9 = arith.constant 0 : index
    %c0_10 = arith.constant 0 : index
    %18 = vector.load %arg4[%c0_9, %c0_10] : memref<8x256xf32, #tpu.memory_space<vmem>>, vector<8x256xf32>
    %19 = vector.broadcast %14 : vector<8x1xf32> to vector<8x256xf32>
    %20 = arith.mulf %18, %19 : vector<8x256xf32>
    %21 = vector.broadcast %17 : vector<8x1xf32> to vector<8x256xf32>
    %22 = arith.addf %20, %21 : vector<8x256xf32>
    %cst_11 = arith.constant 0.000000e+00 : f32
    %23 = vector.broadcast %cst_11 : f32 to vector<8x256xf32>
    %24 = arith.maximumf %22, %23 : vector<8x256xf32>
    %c0_12 = arith.constant 0 : index
    %c0_13 = arith.constant 0 : index
    %25 = vector.load %arg5[%c0_12, %c0_13] : memref<8x256xf32, #tpu.memory_space<vmem>>, vector<8x256xf32>
    tpu.vector_store %arg5[%c0_12, %c0_13], %24 {strides = array<i32>} : memref<8x256xf32, #tpu.memory_space<vmem>>, vector<8x256xf32>,
    return
  }
  func.func @transform_0(%arg0: i32) -> (i32, i32, i32) {
    %c0_i32 = arith.constant 0 : i32
    %c0_i32_0 = arith.constant 0 : i32
    %c0_i32_1 = arith.constant 0 : i32
    %c0_i32_2 = arith.constant 0 : i32
    return %c0_i32, %c0_i32_0, %c0_i32_1 : i32, i32, i32
  }
  func.func @transform_1(%arg0: i32) -> (i32, i32) {
    %c0_i32 = arith.constant 0 : i32
    %c0_i32_0 = arith.constant 0 : i32
    %c0_i32_1 = arith.constant 0 : i32
    return %c0_i32, %c0_i32_0 : i32, i32
  }
  func.func @transform_2(%arg0: i32) -> (i32, i32) {
    %c0_i32 = arith.constant 0 : i32
    %c0_i32_0 = arith.constant 0 : i32
    %c0_i32_1 = arith.constant 0 : i32
    return %c0_i32, %c0_i32_0 : i32, i32
  }
  func.func @transform_3(%arg0: i32) -> (i32, i32) {
    %c0_i32 = arith.constant 0 : i32
    %c0_i32_0 = arith.constant 0 : i32
    return %c0_i32, %arg0 : i32, i32
  }
  func.func @transform_4(%arg0: i32) -> (i32, i32) {
    %c0_i32 = arith.constant 0 : i32
    %c0_i32_0 = arith.constant 0 : i32
    return %c0_i32, %arg0 : i32, i32
  }
}

module attributes {stable_mosaic.version = 11 : i64} {
  func.func @_conv_stats_kernel(%arg0: i32, %arg1: memref<8x72xbf16, #tpu.memory_space<vmem>>, %arg2: memref<72x256xbf16, #tpu.memory_space<vmem>>, %arg3: memref<8x256xf32, #tpu.memory_space<vmem>>, %arg4: memref<1x8x2xf32, #tpu.memory_space<vmem>>) attributes {dimension_semantics = [#tpu.dimension_semantics<parallel>], iteration_bounds = array<i64: 2>, scalar_prefetch = 0 : i64, scratch_operands = 0 : i64, tpu.core_type = #tpu.core_type<tc>, window_params = [{pipeline_mode = #tpu.pipeline_mode<synchronous>, transform_indices = @transform_0, window_bounds = array<i64: 8, 72>}, {transform_indices = @transform_1, window_bounds = array<i64: 72, 256>}, {transform_indices = @transform_2, window_bounds = array<i64: 8, 256>}, {transform_indices = @transform_3, window_bounds = array<i64: 1, 8, 2>}]} {
    %c0 = arith.constant 0 : index
    %c0_0 = arith.constant 0 : index
    %0 = vector.load %arg1[%c0, %c0_0] : memref<8x72xbf16, #tpu.memory_space<vmem>>, vector<8x72xbf16>
    %c0_1 = arith.constant 0 : index
    %c0_2 = arith.constant 0 : index
    %1 = vector.load %arg2[%c0_1, %c0_2] : memref<72x256xbf16, #tpu.memory_space<vmem>>, vector<72x256xbf16>
    %cst = arith.constant dense<0.000000e+00> : vector<8x256xf32>
    %2 = tpu.matmul %0, %1, %cst {dimension_numbers = #tpu.dot_dimension_numbers<[1], [0], [0], [1], [0, 0, 1, 1], [], []>} : vector<8x72xbf16>, vector<72x256xbf16>, vector<8x256xf32> -> vector<8x256xf32>
    %c0_3 = arith.constant 0 : index
    %c0_4 = arith.constant 0 : index
    %3 = vector.load %arg3[%c0_3, %c0_4] : memref<8x256xf32, #tpu.memory_space<vmem>>, vector<8x256xf32>
    tpu.vector_store %arg3[%c0_3, %c0_4], %2 {strides = array<i32>} : memref<8x256xf32, #tpu.memory_space<vmem>>, vector<8x256xf32>,
    %cst_5 = arith.constant dense<0.000000e+00> : vector<8xf32>
    %4 = vector.multi_reduction <add>, %2, %cst_5 [1] : vector<8x256xf32> to vector<8xf32>
    %5 = vector.shape_cast %4 : vector<8xf32> to vector<8x1xf32>
    %6 = arith.mulf %2, %2 : vector<8x256xf32>
    %cst_6 = arith.constant dense<0.000000e+00> : vector<8xf32>
    %7 = vector.multi_reduction <add>, %6, %cst_6 [1] : vector<8x256xf32> to vector<8xf32>
    %8 = vector.shape_cast %7 : vector<8xf32> to vector<8x1xf32>
    %9 = tpu.concatenate %5, %8 in 1 : vector<8x1xf32>, vector<8x1xf32> -> vector<8x2xf32>
    %10 = vector.shape_cast %9 : vector<8x2xf32> to vector<1x8x2xf32>
    %c0_7 = arith.constant 0 : index
    %c0_8 = arith.constant 0 : index
    %c0_9 = arith.constant 0 : index
    %11 = vector.load %arg4[%c0_7, %c0_8, %c0_9] : memref<1x8x2xf32, #tpu.memory_space<vmem>>, vector<1x8x2xf32>
    tpu.vector_store %arg4[%c0_7, %c0_8, %c0_9], %10 {strides = array<i32>} : memref<1x8x2xf32, #tpu.memory_space<vmem>>, vector<1x8x2xf32>,
    return
  }
  func.func @transform_0(%arg0: i32) -> (i32, i32) {
    %c0_i32 = arith.constant 0 : i32
    %c0_i32_0 = arith.constant 0 : i32
    %c0_i32_1 = arith.constant 0 : i32
    return %c0_i32, %c0_i32_0 : i32, i32
  }
  func.func @transform_1(%arg0: i32) -> (i32, i32) {
    %c0_i32 = arith.constant 0 : i32
    %c0_i32_0 = arith.constant 0 : i32
    return %c0_i32, %arg0 : i32, i32
  }
  func.func @transform_2(%arg0: i32) -> (i32, i32) {
    %c0_i32 = arith.constant 0 : i32
    %c0_i32_0 = arith.constant 0 : i32
    return %c0_i32, %arg0 : i32, i32
  }
  func.func @transform_3(%arg0: i32) -> (i32, i32, i32) {
    %c0_i32 = arith.constant 0 : i32
    %c0_i32_0 = arith.constant 0 : i32
    %c0_i32_1 = arith.constant 0 : i32
    return %arg0, %c0_i32, %c0_i32_0 : i32, i32, i32
  }
}

</mosaic_0001>

<bundles_post_ra>
// kernel: inconv_forward.4
= control target key start
LH: loop header
LB: loop body
LE: loop exit
PB: predicated region body
PF: predicated region fallthrough
CT: control target
= control target key end

     0   :  { %s527_s12 = smov 0   ;;  %s529_s13 = smov 0   ;;  %s588_s0 = inlined_call_operand.vmem [shape: bf16[8,36], index: 0, kind: input, shape index: {}]   ;;  %s589_s1 = inlined_call_operand.vmem [shape: bf16[36,512], index: 1, kind: input, shape index: {}]   ;;  %s590_s2 = inlined_call_operand.vmem [shape: f32[8,512], index: 2, kind: output, shape index: {0}]   ;;  %s591_s3 = inlined_call_operand.vmem [shape: f32[2,8,2], index: 3, kind: output, shape index: {1}]  }
   0x1   :  { %s531_s14 = smov 0  }
   0x2 LB: > { %s543_s15 = sadd.s32 4294967295, %s504_s14   ;;  %s546_s16 = sadd.s32 1, %s504_s14   ;;  %s504_s14 = sphi %s531_s14, %s594_s14   ;;  %s500_s13 = sphi %s529_s13, %s593_s13   ;;  %s496_s12 = sphi %s527_s12, %s592_s12  }
   0x3   : > { %s39_s17 = ssub.s32 %s504_s14, %s546_s16  ;;  %s42_s18 = sadd.s32 1, %s500_s13 }
   0x4   : > { %p40_p0 = scmp.eq.s32.totalorder %s39_s17, 0  ;;  %p49_p1 = scmp.ne.s32.totalorder %s500_s13, %s496_s12 }
   0x5   : > { %p50_p2 = scmp.eq.s32.totalorder %s504_s14, 0  ;;  %p429_p4 = scmp.ge.s32.totalorder %s504_s14, 2 }
   0x6   : > { %s555_s19 = scalar_select %p40_p0, %s500_s13, %s42_s18  }
   0x7   : > { %p51_p3 = por %p50_p2, %p49_p1  ;;  %130 = sbr.rel (%p429_p4) target bundleno = 21 (0x15), region = 20 }
   0xe   : > { %133 = sbr.rel (!%p51_p3) target bundleno = 21 (0x15), region = 24  ;;  %s135_s20 = sand.u32 (%p51_p3), 1, %s500_s13  }
   0xf   : > { %s446_s21 = sshll.u32 (%p51_p3), %s504_s14, 3  ;;  %s447_s22 = smul.u32 (%p51_p3), 40, %s135_s20 }
  0x10   : > { %s140_s25 = scalar_lea.vmem (%p51_p3), %s589_s1, %s446_s21 }
  0x11   : > { %v176_v0 = vld [vmem:[%s140_s25] sm:$0xff] (%p51_p3)  ;;  %v178_v1 = vld [vmem:[%s140_s25 + $0x10] sm:$0xff] (%p51_p3)  ;;  %s137_s26 = scalar_lea.vmem (%p51_p3), [#allocation2], %s447_s22 }
  0x12   : > { %v180_v2 = vld [vmem:[%s140_s25 + $0x20] sm:$0xff] (%p51_p3)  ;;  %v182_v3 = vld [vmem:[%s140_s25 + $0x30] sm:$0xff] (%p51_p3)  ;;  %177 = vst [vmem:[%s137_s26] sm:$0xff] (%p51_p3), %v176_v0  ;;  %179 = vst [vmem:[%s137_s26 + $0x8] sm:$0xff] (%p51_p3), %v178_v1 }
  0x13   : > { %v184_v4 = vld [vmem:[%s140_s25 + $0x40] sm:$0xff] (%p51_p3)  ;;  %181 = vst [vmem:[%s137_s26 + $0x10] sm:$0xff] (%p51_p3), %v180_v2  ;;  %183 = vst [vmem:[%s137_s26 + $0x18] sm:$0xff] (%p51_p3), %v182_v3 }
  0x14   : > { %185 = vst [vmem:[%s137_s26 + $0x20] sm:$0xff] (%p51_p3), %v184_v4 }
  0x15 PF: > { %p432_p5 = scmp.ge.s32.totalorder %s504_s14, 1  ;;  %p190_p6 = scmp.lt.s32.totalorder %s504_s14, 3 }
  0x17   : > { %p191_p7 = pnand %p432_p5, %p190_p6 }
  0x18   : > { %s197_s27 = sand.u32 (!%p191_p7), 1, %s496_s12   ;;  %v506_v5 = vmov (!%p191_p7), 0   ;;  %vm271_vm0 = vcmask (!%p191_p7), 1041408   ;;  %v236_v14 = vld [vmem:[%s588_s0] sm:$0xf] (!%p191_p7)  ;;  %vm267_vm1 = vcmask (!%p191_p7), 293888  }
  0x19   : > { %194 = sbr.rel (%p191_p7) target bundleno = 405 (0x195), region = 62  ;;  %310 = vmatprep.mubr.bf16.mxu0 (!%p191_p7), %v506_v5  ;;  %s433_s5 = sshll.u32 (!%p191_p7), %s543_s15, 1  ;;  %vm329_vm2 = vcmask (!%p191_p7), 7168   ;;  %vm331_vm3 = vcmask (!%p191_p7), 15360  }
  0x1a   : > { %s448_s28 = smul.u32 (!%p191_p7), 40, %s197_s27  ;;  %p226_p8 = scmp.lt.s32.totalorder (!%p191_p7), %s433_s5, 3 }
  0x1b   : > { %p231_p9 = scmp.lt.s32.totalorder (!%p191_p7), %s543_s15, 1 }
  0x1c   : > { %s199_s29 = scalar_lea.vmem (!%p191_p7), [#allocation2], %s448_s28 }
  0x1d   : > { %v474_v6 = vld [vmem:[%s199_s29 + $0x4] ss:$8 sps:$4 sm:$0xff] (!%p191_p7)   ;;  %v476_v7 = vld [vmem:[%s199_s29] ss:$8 sps:$4 sm:$0xff] (!%p191_p7)   ;;  %v477_v8 = vld [vmem:[%s199_s29 + $0x14] ss:$8 sps:$4 sm:$0xff] (!%p191_p7)  }
  0x1e   : > { %278 = vmatprep.subr.bf16.mxu0 (!%p191_p7), %v474_v6  ;;  %v241_v9 = vld [vmem:[%s199_s29 + $0x20] sm:$0x33] (!%p191_p7)  ;;  %v479_v10 = vld [vmem:[%s199_s29 + $0x10] ss:$8 sps:$4 sm:$0xff] (!%p191_p7)  }
  0x1f   : > { %279 = vmatpush1.bf16.msra.mxu0 (!%p191_p7), %v476_v7  ;;  %v441_v11 = vcombine.high (!%p191_p7), %v241_v9, %v241_v9  ;;  %v440_v12 = vcombine.low (!%p191_p7), %v241_v9, %v241_v9 }
  0x20   : > { %280 = vmatprep.subr.bf16.mxu0 %v477_v8  ;;  %s596_s5 = smov (!%p226_p8, %s433_s5), 3  ;;  %s598_s15 = smov (!%p231_p9, %s543_s15), 1 }
  0x21   : > { %v273_v13 = vsel %vm271_vm0, %v440_v12, 0  ;;  %s434_s6 = sshll.u32 %s596_s5, 3  ;;  %s435_s10 = sshll.u32 %s598_s15, 3 }
  0x22   : > { %s229_s9 = scalar_lea.vmem %s590_s2, %s434_s6  ;;  %s234_s14 = scalar_lea.vmem %s591_s3, %s435_s10 }
  0x23   : > { %281 = vmatpush1.bf16.msra.mxu0 %v479_v10 }
  0x24   : > { %442 = vmatprep.subr.msk.bf16.mxu0 %vm271_vm0, %v441_v11 }
  0x27   : > { %283 = vmatpush1.bf16.msra.mxu0 %v273_v13 }
  0x2a   : > { %443 = vmatmul.mubr.msk.bf16.vlgmr.msra.gmra.mrb[0].mxu0 %vm267_vm1, %v236_v14 }
  0xfd   : > { %v312_v15 = vpop.f32.mrb[0].mxu0 }
  0xfe   : > { %319 = vst [vmem:[%s229_s9] sm:$0xff] %v312_v15  ;;  %v314_v16 = vpop.f32.mrb[1].mxu0  ;;  %v324_v17 = vmul.f32 %v312_v15, %v312_v15 }
  0xff   : > { %320 = vst [vmem:[%s229_s9 + $0x8] sm:$0xff] %v314_v16  ;;  %v316_v18 = vpop.f32.mrb[2].mxu0  ;;  %v321_v19 = vadd.f32 %v314_v16, %v312_v15  ;;  %v325_v20 = vmul.f32 %v314_v16, %v314_v16 }
 0x100   : > { %v317_v21 = vpop.f32.mrb[3].mxu0 }
 0x101   : > { %322 = vadd.xlane.f32.xlu0 %v321_v19  ;;  %v326_v22 = vadd.f32 %v325_v20, %v324_v17 }
 0x105   : > { %327 = vadd.xlane.f32.xlu0 %v326_v22 }
 0x18e   : > { %v323_v23 = vpop.xlane.xlu0 %322 }
 0x192   : > { %v328_v24 = vpop.xlane.xlu0 %327 }
 0x193   : > { %v330_v25 = vsel %vm329_vm2, %v323_v23, %v328_v24 }
 0x194   : > { %332 = vst.msk [vmem:[%s234_s14] sm:$0xff] %vm331_vm3, %v330_v25 }
 0x195 PF: > { %p11_p10 = scmp.ge.s32.totalorder %s546_s16, 4   ;;  %s592_s12 = smov %s500_s13 }
 0x196   : > { %s593_s13 = smov %s555_s19  ;;  %s594_s14 = smov %s546_s16 }
 0x197   :  { %13 = sbr.rel (!%p11_p10) target bundleno = 2 (0x2), region = 113 }

// kernel: inconv_forward.5
= control target key start
LH: loop header
LB: loop body
LE: loop exit
PB: predicated region body
PF: predicated region fallthrough
CT: control target
= control target key end

     0   :  { %s363_s15 = smov 0   ;;  %s394_s0 = inlined_call_operand.vmem [shape: f32[2,8,2], index: 0, kind: input, shape index: {}]   ;;  %s395_s1 = inlined_call_operand.vmem [shape: f32[8,1], index: 1, kind: input, shape index: {}]   ;;  %s396_s2 = inlined_call_operand.vmem [shape: f32[8,1], index: 2, kind: input, shape index: {}]   ;;  %s397_s3 = inlined_call_operand.vmem [shape: f32[8,512], index: 3, kind: input, shape index: {}]   ;;  %s398_s4 = inlined_call_operand.vmem [shape: f32[8,512], index: 4, kind: output, shape index: {}]  }
   0x1 LB: > { %s301_s16 = sadd.s32 4294967295, %s333_s15   ;;  %p305_p0 = scmp.ge.s32.totalorder %s333_s15, 1  ;;  %s333_s15 = sphi %s363_s15, %s14_s15  }
   0x2   : > { %p163_p1 = scmp.lt.s32.totalorder %s333_s15, 3 }
   0x4   : > { %p164_p2 = pnand %p305_p0, %p163_p1 }
   0x5   : > { %v201_v0 = vld [vmem:[%s394_s0] sm:$0xff] (!%p164_p2)  ;;  %v202_v1 = vld [vmem:[%s394_s0 + $0x8] sm:$0xff] (!%p164_p2)  ;;  %vm203_vm0 = vcmask (!%p164_p2), 15360   ;;  %s335_s21 = smov (!%p164_p2), 1   ;;  %v336_v10 = vmov (!%p164_p2), 0   ;;  %s337_s22 = smov (!%p164_p2), 127  }
   0x6   : > { %167 = sbr.rel (%p164_p2) target bundleno = 397 (0x18d), region = 36  ;;  %v204_v2 = vsel (!%p164_p2), %vm203_vm0, %v201_v0, 0.0  ;;  %v205_v3 = vsel (!%p164_p2), %vm203_vm0, %v202_v1, 0.0  ;;  %323 = vset.pattern.permute.xlu1 (!%p164_p2), %v336_v10  ;;  %324 = vset.pattern.permute.xlu0 (!%p164_p2), %v336_v10  ;;  %v216_v12 = vld [vmem:[%s395_s1] sm:$0xff] (!%p164_p2)  ;;  %s306_s27 = sshll.u32 (!%p164_p2), %s301_s16, 1 }
   0x7   : > { %v206_v4 = vadd.f32 (!%p164_p2), %v205_v3, %v204_v2  ;;  %v222_v15 = vld [vmem:[%s396_s2] sm:$0xff] (!%p164_p2)  ;;  %p190_p3 = scmp.lt.s32.totalorder (!%p164_p2), %s306_s27, 3 }
   0x9   : > { %v207_v5 = vmul.f32 (!%p164_p2), 0.001953125, %v206_v4 }
   0xb   : > { %v208_v6 = vmul.f32 (!%p164_p2), %v207_v5, %v207_v5 }
   0xd   : > { %210 = vrot.lane.b32.xlu0 %v208_v6, %s335_s21  ;;  %s400_s27 = smov (!%p190_p3, %s306_s27), 3 }
   0xe   : > { %s307_s28 = sshll.u32 %s400_s27, 3 }
   0xf   : > { %s193_s5 = scalar_lea.vmem %s397_s3, %s307_s28  ;;  %s199_s8 = scalar_lea.vmem %s398_s4, %s307_s28 }
  0x10   : > { %v225_v19 = vld [vmem:[%s193_s5] sm:$0xff]  ;;  %v226_v20 = vld [vmem:[%s193_s5 + $0x8] sm:$0xff] }
  0x7f   : > { %v211_v7 = vpop.permute.xlu0 %210 }
  0x80   : > { %v213_v8 = vsub.f32 %v207_v5, %v211_v7 }
  0x82   : > { %v214_v9 = vadd.f32 1e-05, %v213_v8 }
  0x84   : > { %325 = vrsqrt.f32 %v214_v9 }
  0x8e   : > { %v326_v11 = vpop.eup %325 }
  0x8f   : > { %218 = vrot.lane.b32.xlu0 %v326_v11, %s337_s22 }
 0x101   : > { %v219_v13 = vpop.permute.xlu0 %218 }
 0x102   : > { %v221_v14 = vmul.f32 %v219_v13, %v216_v12 }
 0x104   : > { %v223_v16 = vmul.f32 %v221_v14, %v207_v5  ;;  %229 = vperm.xlu1 %323, %v221_v14  }
 0x106   : > { %v224_v17 = vsub.f32 %v222_v15, %v223_v16 }
 0x108   : > { %236 = vperm.xlu1 %323, %v224_v17  }
 0x183   : > { %v230_v18 = vpop.permute.xlu1 %229 }
 0x184   : > { %v232_v21 = vmul.f32 %v230_v18, %v225_v19  ;;  %v233_v22 = vmul.f32 %v230_v18, %v226_v20 }
 0x187   : > { %v237_v23 = vpop.permute.xlu1 %236 }
 0x188   : > { %v239_v24 = vadd.f32 %v237_v23, %v232_v21  ;;  %v240_v25 = vadd.f32 %v237_v23, %v233_v22 }
 0x18a   : > { %v241_v26 = vmax.f32 %v239_v24, 0.0  ;;  %v242_v27 = vmax.f32 %v240_v25, 0.0 }
 0x18c   : > { %243 = vst [vmem:[%s199_s8] sm:$0xff] %v241_v26  ;;  %244 = vst [vmem:[%s199_s8 + $0x8] sm:$0xff] %v242_v27 }
 0x18d PF: > { %s14_s15 = sadd.s32 1, %s333_s15  }
 0x18e   : > { %p11_p4 = scmp.ge.s32.totalorder %s14_s15, 4  }
 0x190   :  { %13 = sbr.rel (!%p11_p4) target bundleno = 1 (0x1), region = 66 }

// kernel: inconv_forward.6
= control target key start
LH: loop header
LB: loop body
LE: loop exit
PB: predicated region body
PF: predicated region fallthrough
CT: control target
= control target key end

     0   :  { %s577_s12 = smov 0   ;;  %s579_s13 = smov 0   ;;  %s638_s0 = inlined_call_operand.vmem [shape: bf16[8,72], index: 0, kind: input, shape index: {}]   ;;  %s639_s1 = inlined_call_operand.vmem [shape: bf16[72,512], index: 1, kind: input, shape index: {}]   ;;  %s640_s2 = inlined_call_operand.vmem [shape: f32[8,512], index: 2, kind: output, shape index: {0}]   ;;  %s641_s3 = inlined_call_operand.vmem [shape: f32[2,8,2], index: 3, kind: output, shape index: {1}]  }
   0x1   :  { %s581_s14 = smov 0  }
   0x2 LB: > { %s593_s15 = sadd.s32 4294967295, %s554_s14   ;;  %s596_s16 = sadd.s32 1, %s554_s14   ;;  %s554_s14 = sphi %s581_s14, %s644_s14   ;;  %s550_s13 = sphi %s579_s13, %s643_s13   ;;  %s546_s12 = sphi %s577_s12, %s642_s12  }
   0x3   : > { %s39_s17 = ssub.s32 %s554_s14, %s596_s16  ;;  %s42_s18 = sadd.s32 1, %s550_s13 }
   0x4   : > { %p40_p0 = scmp.eq.s32.totalorder %s39_s17, 0  ;;  %p49_p1 = scmp.ne.s32.totalorder %s550_s13, %s546_s12 }
   0x5   : > { %p50_p2 = scmp.eq.s32.totalorder %s554_s14, 0  ;;  %p469_p4 = scmp.ge.s32.totalorder %s554_s14, 2 }
   0x6   : > { %s605_s19 = scalar_select %p40_p0, %s550_s13, %s42_s18  }
   0x7   : > { %p51_p3 = por %p50_p2, %p49_p1  ;;  %130 = sbr.rel (%p469_p4) target bundleno = 23 (0x17), region = 20 }
   0xe   : > { %133 = sbr.rel (!%p51_p3) target bundleno = 23 (0x17), region = 24  ;;  %s135_s20 = sand.u32 (%p51_p3), 1, %s550_s13  }
   0xf   : > { %s490_s21 = sshll.u32 (%p51_p3), %s554_s14, 3  ;;  %s491_s22 = smul.u32 (%p51_p3), 72, %s135_s20 }
  0x10   : > { %s140_s25 = scalar_lea.vmem (%p51_p3), %s639_s1, %s490_s21 }
  0x11   : > { %v184_v0 = vld [vmem:[%s140_s25] sm:$0xff] (%p51_p3)  ;;  %v186_v1 = vld [vmem:[%s140_s25 + $0x10] sm:$0xff] (%p51_p3)  ;;  %s137_s26 = scalar_lea.vmem (%p51_p3), [#allocation2], %s491_s22 }
  0x12   : > { %v188_v2 = vld [vmem:[%s140_s25 + $0x20] sm:$0xff] (%p51_p3)  ;;  %v190_v3 = vld [vmem:[%s140_s25 + $0x30] sm:$0xff] (%p51_p3)  ;;  %185 = vst [vmem:[%s137_s26] sm:$0xff] (%p51_p3), %v184_v0  ;;  %187 = vst [vmem:[%s137_s26 + $0x8] sm:$0xff] (%p51_p3), %v186_v1 }
  0x13   : > { %v192_v4 = vld [vmem:[%s140_s25 + $0x40] sm:$0xff] (%p51_p3)  ;;  %v194_v5 = vld [vmem:[%s140_s25 + $0x50] sm:$0xff] (%p51_p3)  ;;  %189 = vst [vmem:[%s137_s26 + $0x10] sm:$0xff] (%p51_p3), %v188_v2  ;;  %191 = vst [vmem:[%s137_s26 + $0x18] sm:$0xff] (%p51_p3), %v190_v3 }
  0x14   : > { %193 = vst [vmem:[%s137_s26 + $0x20] sm:$0xff] (%p51_p3), %v192_v4  ;;  %195 = vst [vmem:[%s137_s26 + $0x28] sm:$0xff] (%p51_p3), %v194_v5  ;;  %v196_v6 = vld [vmem:[%s140_s25 + $0x60] sm:$0xff] (%p51_p3)  ;;  %v198_v7 = vld [vmem:[%s140_s25 + $0x70] sm:$0xff] (%p51_p3) }
  0x15   : > { %v200_v8 = vld [vmem:[%s140_s25 + $0x80] sm:$0xff]  ;;  %197 = vst [vmem:[%s137_s26 + $0x30] sm:$0xff] %v196_v6  ;;  %199 = vst [vmem:[%s137_s26 + $0x38] sm:$0xff] %v198_v7 }
  0x16   : > { %201 = vst [vmem:[%s137_s26 + $0x40] sm:$0xff] %v200_v8 }
  0x17 PF: > { %p472_p5 = scmp.ge.s32.totalorder %s554_s14, 1  ;;  %p206_p6 = scmp.lt.s32.totalorder %s554_s14, 3 }
  0x19   : > { %p207_p7 = pnand %p472_p5, %p206_p6 }
  0x1a   : > { %s213_s27 = sand.u32 (!%p207_p7), 1, %s546_s12   ;;  %v556_v9 = vmov (!%p207_p7), 0   ;;  %vm311_vm0 = vcmask (!%p207_p7), 1043456   ;;  %v252_v22 = vld [vmem:[%s638_s0] sm:$0xf] (!%p207_p7)  ;;  %vm307_vm1 = vcmask (!%p207_p7), 588800  }
  0x1b   : > { %210 = sbr.rel (%p207_p7) target bundleno = 415 (0x19f), region = 62  ;;  %350 = vmatprep.mubr.bf16.mxu0 (!%p207_p7), %v556_v9  ;;  %s473_s5 = sshll.u32 (!%p207_p7), %s593_s15, 1  ;;  %vm369_vm2 = vcmask (!%p207_p7), 7168   ;;  %vm371_vm3 = vcmask (!%p207_p7), 15360  }
  0x1c   : > { %s492_s28 = smul.u32 (!%p207_p7), 72, %s213_s27  ;;  %p242_p8 = scmp.lt.s32.totalorder (!%p207_p7), %s473_s5, 3 }
  0x1d   : > { %p247_p9 = scmp.lt.s32.totalorder (!%p207_p7), %s593_s15, 1 }
  0x1e   : > { %s215_s29 = scalar_lea.vmem (!%p207_p7), [#allocation2], %s492_s28 }
  0x1f   : > { %v518_v10 = vld [vmem:[%s215_s29 + $0x4] ss:$8 sps:$4 sm:$0xff] (!%p207_p7)   ;;  %v520_v11 = vld [vmem:[%s215_s29] ss:$8 sps:$4 sm:$0xff] (!%p207_p7)   ;;  %v521_v12 = vld [vmem:[%s215_s29 + $0x14] ss:$8 sps:$4 sm:$0xff] (!%p207_p7)  }
  0x20   : > { %318 = vmatprep.subr.bf16.mxu0 (!%p207_p7), %v518_v10  ;;  %v523_v13 = vld [vmem:[%s215_s29 + $0x10] ss:$8 sps:$4 sm:$0xff] (!%p207_p7)   ;;  %v524_v14 = vld [vmem:[%s215_s29 + $0x24] ss:$8 sps:$4 sm:$0xff] (!%p207_p7)   ;;  %v526_v15 = vld [vmem:[%s215_s29 + $0x20] ss:$8 sps:$4 sm:$0xff] (!%p207_p7)  }
  0x21   : > { %319 = vmatpush1.bf16.msra.mxu0 (!%p207_p7), %v520_v11  ;;  %v527_v16 = vld [vmem:[%s215_s29 + $0x34] ss:$8 sps:$4 sm:$0xff] (!%p207_p7)   ;;  %v261_v17 = vld [vmem:[%s215_s29 + $0x40] sm:$0xff] (!%p207_p7)  ;;  %v529_v18 = vld [vmem:[%s215_s29 + $0x30] ss:$8 sps:$4 sm:$0xff] (!%p207_p7)  }
  0x22   : > { %320 = vmatprep.subr.bf16.mxu0 %v521_v12  ;;  %v485_v19 = vcombine.high %v261_v17, %v261_v17  ;;  %v484_v20 = vcombine.low %v261_v17, %v261_v17  ;;  %s646_s5 = smov (!%p242_p8, %s473_s5), 3  ;;  %s648_s15 = smov (!%p247_p9, %s593_s15), 1 }
  0x23   : > { %s474_s6 = sshll.u32 %s646_s5, 3  ;;  %s475_s10 = sshll.u32 %s648_s15, 3 }
  0x24   : > { %v313_v21 = vsel %vm311_vm0, %v484_v20, 0  ;;  %s245_s9 = scalar_lea.vmem %s640_s2, %s474_s6  ;;  %s250_s14 = scalar_lea.vmem %s641_s3, %s475_s10 }
  0x25   : > { %321 = vmatpush1.bf16.msra.mxu0 %v523_v13 }
  0x26   : > { %322 = vmatprep.subr.bf16.mxu0 %v524_v14 }
  0x29   : > { %323 = vmatpush1.bf16.msra.mxu0 %v526_v15 }
  0x2a   : > { %324 = vmatprep.subr.bf16.mxu0 %v527_v16 }
  0x2d   : > { %325 = vmatpush1.bf16.msra.mxu0 %v529_v18 }
  0x2e   : > { %486 = vmatprep.subr.msk.bf16.mxu0 %vm311_vm0, %v485_v19 }
  0x31   : > { %327 = vmatpush1.bf16.msra.mxu0 %v313_v21 }
  0x34   : > { %487 = vmatmul.mubr.msk.bf16.vlgmr.msra.gmra.mrb[0].mxu0 %vm307_vm1, %v252_v22 }
 0x107   : > { %v352_v23 = vpop.f32.mrb[0].mxu0 }
 0x108   : > { %359 = vst [vmem:[%s245_s9] sm:$0xff] %v352_v23  ;;  %v354_v24 = vpop.f32.mrb[1].mxu0  ;;  %v364_v25 = vmul.f32 %v352_v23, %v352_v23 }
 0x109   : > { %360 = vst [vmem:[%s245_s9 + $0x8] sm:$0xff] %v354_v24  ;;  %v356_v26 = vpop.f32.mrb[2].mxu0  ;;  %v361_v27 = vadd.f32 %v354_v24, %v352_v23  ;;  %v365_v28 = vmul.f32 %v354_v24, %v354_v24 }
 0x10a   : > { %v357_v29 = vpop.f32.mrb[3].mxu0 }
 0x10b   : > { %362 = vadd.xlane.f32.xlu0 %v361_v27  ;;  %v366_v30 = vadd.f32 %v365_v28, %v364_v25 }
 0x10f   : > { %367 = vadd.xlane.f32.xlu0 %v366_v30 }
 0x198   : > { %v363_v31 = vpop.xlane.xlu0 %362 }
 0x19c   : > { %v368_v32 = vpop.xlane.xlu0 %367 }
 0x19d   : > { %v370_v33 = vsel %vm369_vm2, %v363_v31, %v368_v32 }
 0x19e   : > { %372 = vst.msk [vmem:[%s250_s14] sm:$0xff] %vm371_vm3, %v370_v33 }
 0x19f PF: > { %p11_p10 = scmp.ge.s32.totalorder %s596_s16, 4   ;;  %s642_s12 = smov %s550_s13 }
 0x1a0   : > { %s643_s13 = smov %s605_s19  ;;  %s644_s14 = smov %s596_s16 }
 0x1a1   :  { %13 = sbr.rel (!%p11_p10) target bundleno = 2 (0x2), region = 113 }

</bundles_post_ra>
